<compile_context>
chip_gen: v7x
topology: tpu7x:2x2x1
jax: 0.10.0
libtpu: 0.0.40
codegen_flags: <defaults>
</compile_context>

<pallas_src>
import functools
import math

import jax
import jax.numpy as jnp
from jax.experimental import pallas as pl
from jax.experimental.pallas import tpu as pltpu

LN_EPS = 1e-5  # torch.nn.LayerNorm default


def _round_up(x: int, m: int) -> int:
    return (x + m - 1) // m * m


def _cdiv(a: int, b: int) -> int:
    return (a + b - 1) // b


def _tpu_info():
    try:
        return pltpu.get_tpu_info()
    except Exception:
        return None


def _num_tensorcores() -> int:
    """Best-effort TensorCore count; fall back to 1 (v5e/v6e behaviour)."""
    info = _tpu_info()
    if info is not None:
        for name in ("num_cores", "core_count", "num_tensorcores", "tensorcore_count",
                     "cores_per_chip"):
            v = getattr(info, name, None)
            if isinstance(v, int) and v > 0:
                return v
    return 1


def _vmem_budget_bytes() -> int:
    """Scoped-VMEM budget derived from physical VMEM with headroom (v7x-safe fallback)."""
    phys = None
    info = _tpu_info()
    if info is not None:
        for name in ("vmem_capacity_bytes", "vmem_size_bytes", "vmem_bytes"):
            v = getattr(info, name, None)
            if isinstance(v, int) and v > 0:
                phys = v
                break
    if phys is None:
        phys = 64 * 1024 * 1024  # conservative: assume v7x (smallest physical VMEM)
    return max(16 * 1024 * 1024, min(int(phys * 0.7), 100 * 1024 * 1024))


def _choose_row_tile(m_rows: int, seq_len: int, feat: int, h_pad: int,
                     *, vmem_budget: int, num_cores: int) -> int:
    """VMEM-aware, generation-gated row-tile size, aligned with the sequence length."""
    # Streaming (double-buffered) per-row bytes: x rows (F f32) + out rows (H_pad f32).
    per_row = 2 * 4 * (feat + h_pad)
    # Resident blocks (weight f32, packed params, PE table); counted x2 as a safety margin
    # in case single-buffering is unavailable.
    resident = 2 * 4 * (feat * h_pad + 8 * h_pad + max(seq_len, 8) * h_pad)
    cap = max(8, (vmem_budget - resident) // per_row)

    # Aim for ~one tile per TensorCore; only split small M when a second core can use it.
    target = max(8, min(_cdiv(m_rows, max(1, num_cores)), cap, 1024))

    if target >= seq_len:
        # Tile is a multiple of S (and of the 8-row sublane granule): the (S, H_pad) PE table
        # is simply replicated TM//S times inside the kernel.
        step = seq_len * (8 // math.gcd(seq_len, 8))
        return max(step, (target // step) * step)
    # Tile divides S: the PE block is selected by the index_map (i % (S // TM)).
    for d in range(target - target % 8, 7, -8):
        if seq_len % d == 0:
            return d
    # No 8-aligned divisor of S below the target: fall back to one sequence per tile.
    return seq_len * (8 // math.gcd(seq_len, 8))


def _feature_encoder_kernel(x_ref, w_ref, params_ref, pe_ref, o_ref, *, hidden_real, pe_reps):
    # x_ref:      (TM, F)          f32  rows of the flattened (B*S, F) input
    # w_ref:      (F, H_pad)       f32  projection weight (H zero-padded)
    # params_ref: (8, H_pad)       f32  rows: 0 bias, 1 gamma, 2 beta, 3 real-lane mask
    # pe_ref:     (S or TM, H_pad) f32  sinusoidal positional-encoding table
    # o_ref:      (TM, H_pad)
    h = jnp.dot(x_ref[...], w_ref[...], preferred_element_type=jnp.float32)
    h = h + params_ref[0:1, :]                      # bias (padded lanes stay exactly 0)

    # Numerically-stable two-pass LayerNorm over the real hidden width.
    inv_h = 1.0 / hidden_real
    mean = jnp.sum(h, axis=-1, keepdims=True) * inv_h
    centered = (h - mean) * params_ref[3:4, :]      # mask padded lanes back to 0
    var = jnp.sum(centered * centered, axis=-1, keepdims=True) * inv_h
    h = centered * jax.lax.rsqrt(var + LN_EPS)
    h = h * params_ref[1:2, :] + params_ref[2:3, :]  # gamma / beta (0 on padded lanes)

    h = jnp.maximum(h, 0.0)                          # ReLU
    # TODO(synk): training-mode dropout (pltpu.prng_seed / prng_random_bits) not implemented;
    # eval semantics (identity) only.

    pe = pe_ref[...]
    if pe_reps > 1:
        # Replicate the (S, H_pad) table to cover the TM rows of this tile
        # (TM % S == 0 by construction of the tile chooser).
        pe = jnp.concatenate([pe] * pe_reps, axis=0)
    o_ref[...] = (h + pe).astype(o_ref.dtype)


def make_positional_encoding(seq_len: int, hidden_dim: int) -> jnp.ndarray:
    """Standard sinusoidal positional encoding, shape (seq_len, hidden_dim)."""
    position = jnp.arange(seq_len, dtype=jnp.float32)[:, None]
    div_term = jnp.exp(
        jnp.arange(0, hidden_dim, 2, dtype=jnp.float32) * (-math.log(10000.0) / hidden_dim)
    )
    pe = jnp.zeros((seq_len, hidden_dim), dtype=jnp.float32)
    pe = pe.at[:, 0::2].set(jnp.sin(position * div_term))
    pe = pe.at[:, 1::2].set(jnp.cos(position * div_term))
    return pe


def feature_encoder(x, w, b, gamma, beta, pe, *, out_dtype=jnp.float32):
    """x: (B, S, F) float32 -> (B, S, H).  out_dtype=bf16 is a bandwidth lever (esp. v5e)."""
    B, S, F = x.shape
    H = w.shape[1]
    H_pad = _round_up(H, 128)
    M = B * S

    num_cores = _num_tensorcores()
    vmem_budget = _vmem_budget_bytes()
    TM = _choose_row_tile(M, S, F, H_pad, vmem_budget=vmem_budget, num_cores=num_cores)
    M_pad = _round_up(M, TM)
    grid_m = M_pad // TM

    # Flatten (B, S) -> M rows.  Pad only where strictly needed; aligned shapes skip the pad
    # and the post-kernel slice entirely (no extra HBM passes in XLA).
    x2 = x.reshape(M, F)
    if M_pad != M:
        x2 = jnp.pad(x2, ((0, M_pad - M), (0, 0)))
    w2 = w if H_pad == H else jnp.pad(w, ((0, 0), (0, H_pad - H)))

    # Packed per-lane parameters: bias / gamma / beta / real-lane mask in one (8, H_pad) block
    # (one grid-invariant DMA instead of four).
    params = jnp.zeros((8, H_pad), jnp.float32)
    params = params.at[0, :H].set(b)
    params = params.at[1, :H].set(gamma)
    params = params.at[2, :H].set(beta)
    params = params.at[3, :H].set(1.0)

    pe_tbl = (pe if H_pad == H else jnp.pad(pe, ((0, 0), (0, H_pad - H)))).astype(jnp.float32)

    if TM >= S:
        pe_block = (S, H_pad)
        pe_index_map = lambda i: (0, 0)
        pe_reps = TM // S
        pe_invariant = True
    else:
        n_pe_blocks = S // TM
        pe_block = (TM, H_pad)
        pe_index_map = lambda i: (i % n_pe_blocks, 0)
        pe_reps = 1
        pe_invariant = False

    kernel = functools.partial(_feature_encoder_kernel, hidden_real=float(H), pe_reps=pe_reps)

    def call(single_buffer_invariants):
        def spec(shape, index_map, invariant):
            if single_buffer_invariants and invariant:
                try:
                    # Grid-invariant operand: nothing to overlap, so don't double-buffer it.
                    return pl.BlockSpec(shape, index_map, pipeline_mode=pl.Buffered(1))
                except TypeError:
                    pass
            return pl.BlockSpec(shape, index_map)

        return pl.pallas_call(
            kernel,
            out_shape=jax.ShapeDtypeStruct((M_pad, H_pad), out_dtype),
            grid_spec=pltpu.PrefetchScalarGridSpec(
                num_scalar_prefetch=0,
                grid=(grid_m,),
                in_specs=[
                    pl.BlockSpec((TM, F), lambda i: (i, 0)),     # x rows (F un-padded in HBM)
                    spec((F, H_pad), lambda i: (0, 0), True),    # weight, resident
                    spec((8, H_pad), lambda i: (0, 0), True),    # packed bias/gamma/beta/mask
                    spec(pe_block, pe_index_map, pe_invariant),  # small PE table
                ],
                out_specs=pl.BlockSpec((TM, H_pad), lambda i: (i, 0)),
            ),
            compiler_params=pltpu.CompilerParams(
                dimension_semantics=("parallel",),
                vmem_limit_bytes=vmem_budget,
            ),
        )(x2, w2, params, pe_tbl)

    try:
        out_pad = call(True)
    except Exception:
        # Fallback if single-buffered (pl.Buffered(1)) operands are unsupported on this build.
        out_pad = call(False)

    out = out_pad
    if M_pad != M or H_pad != H:
        out = out[:M, :H]
    return out.reshape(B, S, H)


def feature_encoder_ref(x, w, b, gamma, beta, pe):
    """Pure-JAX f32 reference for correctness check."""
    h = jnp.einsum("bsf,fh->bsh", x, w) + b
    mean = jnp.mean(h, axis=-1, keepdims=True)
    var = jnp.mean((h - mean) ** 2, axis=-1, keepdims=True)
    h = (h - mean) / jnp.sqrt(var + LN_EPS)
    h = h * gamma + beta
    h = jnp.maximum(h, 0.0)
    return h + pe[None, :, :]


if __name__ == "__main__":
    # Small shapes consistent with the forward: [batch, seq, feature_dim] -> [batch, seq, hidden_dim]
    B, S, F, H = 2, 8, 16, 32

    key = jax.random.PRNGKey(0)
    kx, kw, kb = jax.random.split(key, 3)

    x = jax.random.normal(kx, (B, S, F), dtype=jnp.float32)

    # Deterministic parameter init (Linear: uniform(-1/sqrt(F), 1/sqrt(F)); LayerNorm: ones/zeros).
    bound = 1.0 / math.sqrt(F)
    w = jax.random.uniform(kw, (F, H), minval=-bound, maxval=bound, dtype=jnp.float32)
    b = jax.random.uniform(kb, (H,), minval=-bound, maxval=bound, dtype=jnp.float32)
    gamma = jnp.ones((H,), dtype=jnp.float32)
    beta = jnp.zeros((H,), dtype=jnp.float32)

    pe = make_positional_encoding(S, H)

    out = feature_encoder(x, w, b, gamma, beta, pe)
    out = jax.block_until_ready(out)

    ref = feature_encoder_ref(x, w, b, gamma, beta, pe)
    assert out.shape == (B, S, H)
    # f32 operands end-to-end; tolerance covers possible bf16-pass MXU default precision.
    assert jnp.allclose(out, ref, atol=1e-2, rtol=1e-2), float(jnp.max(jnp.abs(out - ref)))

    print("KERNEL_OK")
</pallas_src>

<mosaic_0001>
module attributes {stable_mosaic.version = 11 : i64} {
  func.func @_feature_encoder_kernel(%arg0: i32, %arg1: memref<16x16xf32, #tpu.memory_space<vmem>>, %arg2: memref<16x128xf32, #tpu.memory_space<vmem>>, %arg3: memref<8x128xf32, #tpu.memory_space<vmem>>, %arg4: memref<8x128xf32, #tpu.memory_space<vmem>>, %arg5: memref<16x128xf32, #tpu.memory_space<vmem>>) attributes {dimension_semantics = [#tpu.dimension_semantics<parallel>], iteration_bounds = array<i64: 1>, scalar_prefetch = 0 : i64, scratch_operands = 0 : i64, tpu.core_type = #tpu.core_type<tc>, window_params = [{transform_indices = @transform_0, window_bounds = array<i64: 16, 16>}, {pipeline_mode = #tpu.pipeline_mode<synchronous>, transform_indices = @transform_1, window_bounds = array<i64: 16, 128>}, {pipeline_mode = #tpu.pipeline_mode<synchronous>, transform_indices = @transform_2, window_bounds = array<i64: 8, 128>}, {pipeline_mode = #tpu.pipeline_mode<synchronous>, transform_indices = @transform_3, window_bounds = array<i64: 8, 128>}, {transform_indices = @transform_4, window_bounds = array<i64: 16, 128>}]} {
    %c0 = arith.constant 0 : index
    %c0_0 = arith.constant 0 : index
    %0 = vector.load %arg1[%c0, %c0_0] : memref<16x16xf32, #tpu.memory_space<vmem>>, vector<16x16xf32>
    %c0_1 = arith.constant 0 : index
    %c0_2 = arith.constant 0 : index
    %1 = vector.load %arg2[%c0_1, %c0_2] : memref<16x128xf32, #tpu.memory_space<vmem>>, vector<16x128xf32>
    %cst = arith.constant dense<0.000000e+00> : vector<16x128xf32>
    %2 = tpu.matmul %0, %1, %cst {dimension_numbers = #tpu.dot_dimension_numbers<[1], [0], [0], [1], [0, 0, 1, 1], [], []>} : vector<16x16xf32>, vector<16x128xf32>, vector<16x128xf32> -> vector<16x128xf32>
    %c0_3 = arith.constant 0 : index
    %c0_4 = arith.constant 0 : index
    %3 = vector.load %arg3[%c0_3, %c0_4] : memref<8x128xf32, #tpu.memory_space<vmem>>, vector<1x128xf32>
    %4 = vector.broadcast %3 : vector<1x128xf32> to vector<16x128xf32>
    %5 = arith.addf %2, %4 : vector<16x128xf32>
    %cst_5 = arith.constant dense<0.000000e+00> : vector<16xf32>
    %6 = vector.multi_reduction <add>, %5, %cst_5 [1] : vector<16x128xf32> to vector<16xf32>
    %7 = vector.shape_cast %6 : vector<16xf32> to vector<16x1xf32>
    %cst_6 = arith.constant 3.125000e-02 : f32
    %8 = vector.broadcast %cst_6 : f32 to vector<16x1xf32>
    %9 = arith.mulf %7, %8 : vector<16x1xf32>
    %10 = vector.broadcast %9 : vector<16x1xf32> to vector<16x128xf32>
    %11 = arith.subf %5, %10 : vector<16x128xf32>
    %c3 = arith.constant 3 : index
    %c0_7 = arith.constant 0 : index
    %12 = vector.load %arg3[%c3, %c0_7] : memref<8x128xf32, #tpu.memory_space<vmem>>, vector<1x128xf32>
    %13 = vector.broadcast %12 : vector<1x128xf32> to vector<16x128xf32>
    %14 = arith.mulf %11, %13 : vector<16x128xf32>
    %15 = arith.mulf %14, %14 : vector<16x128xf32>
    %cst_8 = arith.constant dense<0.000000e+00> : vector<16xf32>
    %16 = vector.multi_reduction <add>, %15, %cst_8 [1] : vector<16x128xf32> to vector<16xf32>
    %17 = vector.shape_cast %16 : vector<16xf32> to vector<16x1xf32>
    %cst_9 = arith.constant 3.125000e-02 : f32
    %18 = vector.broadcast %cst_9 : f32 to vector<16x1xf32>
    %19 = arith.mulf %17, %18 : vector<16x1xf32>
    %cst_10 = arith.constant 9.99999974E-6 : f32
    %20 = vector.broadcast %cst_10 : f32 to vector<16x1xf32>
    %21 = arith.addf %19, %20 : vector<16x1xf32>
    %22 = math.rsqrt %21 : vector<16x1xf32>
    %23 = vector.broadcast %22 : vector<16x1xf32> to vector<16x128xf32>
    %24 = arith.mulf %14, %23 : vector<16x128xf32>
    %c1 = arith.constant 1 : index
    %c0_11 = arith.constant 0 : index
    %25 = vector.load %arg3[%c1, %c0_11] : memref<8x128xf32, #tpu.memory_space<vmem>>, vector<1x128xf32>
    %26 = vector.broadcast %25 : vector<1x128xf32> to vector<16x128xf32>
    %27 = arith.mulf %24, %26 : vector<16x128xf32>
    %c2 = arith.constant 2 : index
    %c0_12 = arith.constant 0 : index
    %28 = vector.load %arg3[%c2, %c0_12] : memref<8x128xf32, #tpu.memory_space<vmem>>, vector<1x128xf32>
    %29 = vector.broadcast %28 : vector<1x128xf32> to vector<16x128xf32>
    %30 = arith.addf %27, %29 : vector<16x128xf32>
    %cst_13 = arith.constant 0.000000e+00 : f32
    %31 = vector.broadcast %cst_13 : f32 to vector<16x128xf32>
    %32 = arith.maximumf %30, %31 : vector<16x128xf32>
    %c0_14 = arith.constant 0 : index
    %c0_15 = arith.constant 0 : index
    %33 = vector.load %arg4[%c0_14, %c0_15] : memref<8x128xf32, #tpu.memory_space<vmem>>, vector<8x128xf32>
    %34 = tpu.concatenate %33, %33 in 0 : vector<8x128xf32>, vector<8x128xf32> -> vector<16x128xf32>
    %35 = arith.addf %32, %34 : vector<16x128xf32>
    %c0_16 = arith.constant 0 : index
    %c0_17 = arith.constant 0 : index
    %36 = vector.load %arg5[%c0_16, %c0_17] : memref<16x128xf32, #tpu.memory_space<vmem>>, vector<16x128xf32>
    tpu.vector_store %arg5[%c0_16, %c0_17], %35 {strides = array<i32>} : memref<16x128xf32, #tpu.memory_space<vmem>>, vector<16x128xf32>,
    return
  }
  func.func @transform_0(%arg0: i32) -> (i32, i32) {
    %c0_i32 = arith.constant 0 : i32
    %c0_i32_0 = arith.constant 0 : i32
    return %arg0, %c0_i32 : i32, i32
  }
  func.func @transform_1(%arg0: i32) -> (i32, i32) {
    %c0_i32 = arith.constant 0 : i32
    %c0_i32_0 = arith.constant 0 : i32
    %c0_i32_1 = arith.constant 0 : i32
    return %c0_i32, %c0_i32_0 : i32, i32
  }
  func.func @transform_2(%arg0: i32) -> (i32, i32) {
    %c0_i32 = arith.constant 0 : i32
    %c0_i32_0 = arith.constant 0 : i32
    %c0_i32_1 = arith.constant 0 : i32
    return %c0_i32, %c0_i32_0 : i32, i32
  }
  func.func @transform_3(%arg0: i32) -> (i32, i32) {
    %c0_i32 = arith.constant 0 : i32
    %c0_i32_0 = arith.constant 0 : i32
    %c0_i32_1 = arith.constant 0 : i32
    return %c0_i32, %c0_i32_0 : i32, i32
  }
  func.func @transform_4(%arg0: i32) -> (i32, i32) {
    %c0_i32 = arith.constant 0 : i32
    %c0_i32_0 = arith.constant 0 : i32
    return %arg0, %c0_i32 : i32, i32
  }
}

module attributes {stable_mosaic.version = 11 : i64} {
  func.func @_feature_encoder_kernel(%arg0: i32, %arg1: memref<16x16xf32, #tpu.memory_space<vmem>>, %arg2: memref<16x128xf32, #tpu.memory_space<vmem>>, %arg3: memref<8x128xf32, #tpu.memory_space<vmem>>, %arg4: memref<8x128xf32, #tpu.memory_space<vmem>>, %arg5: memref<16x128xf32, #tpu.memory_space<vmem>>) attributes {dimension_semantics = [#tpu.dimension_semantics<parallel>], iteration_bounds = array<i64: 1>, scalar_prefetch = 0 : i64, scratch_operands = 0 : i64, tpu.core_type = #tpu.core_type<tc>, window_params = [{transform_indices = @transform_0, window_bounds = array<i64: 16, 16>}, {pipeline_mode = #tpu.pipeline_mode<synchronous>, transform_indices = @transform_1, window_bounds = array<i64: 16, 128>}, {pipeline_mode = #tpu.pipeline_mode<synchronous>, transform_indices = @transform_2, window_bounds = array<i64: 8, 128>}, {pipeline_mode = #tpu.pipeline_mode<synchronous>, transform_indices = @transform_3, window_bounds = array<i64: 8, 128>}, {transform_indices = @transform_4, window_bounds = array<i64: 16, 128>}]} {
    %c0 = arith.constant 0 : index
    %c0_0 = arith.constant 0 : index
    %0 = vector.load %arg1[%c0, %c0_0] : memref<16x16xf32, #tpu.memory_space<vmem>>, vector<16x16xf32>
    %c0_1 = arith.constant 0 : index
    %c0_2 = arith.constant 0 : index
    %1 = vector.load %arg2[%c0_1, %c0_2] : memref<16x128xf32, #tpu.memory_space<vmem>>, vector<16x128xf32>
    %cst = arith.constant dense<0.000000e+00> : vector<16x128xf32>
    %2 = tpu.matmul %0, %1, %cst {dimension_numbers = #tpu.dot_dimension_numbers<[1], [0], [0], [1], [0, 0, 1, 1], [], []>} : vector<16x16xf32>, vector<16x128xf32>, vector<16x128xf32> -> vector<16x128xf32>
    %c0_3 = arith.constant 0 : index
    %c0_4 = arith.constant 0 : index
    %3 = vector.load %arg3[%c0_3, %c0_4] : memref<8x128xf32, #tpu.memory_space<vmem>>, vector<1x128xf32>
    %4 = vector.broadcast %3 : vector<1x128xf32> to vector<16x128xf32>
    %5 = arith.addf %2, %4 : vector<16x128xf32>
    %cst_5 = arith.constant dense<0.000000e+00> : vector<16xf32>
    %6 = vector.multi_reduction <add>, %5, %cst_5 [1] : vector<16x128xf32> to vector<16xf32>
    %7 = vector.shape_cast %6 : vector<16xf32> to vector<16x1xf32>
    %cst_6 = arith.constant 3.125000e-02 : f32
    %8 = vector.broadcast %cst_6 : f32 to vector<16x1xf32>
    %9 = arith.mulf %7, %8 : vector<16x1xf32>
    %10 = vector.broadcast %9 : vector<16x1xf32> to vector<16x128xf32>
    %11 = arith.subf %5, %10 : vector<16x128xf32>
    %c3 = arith.constant 3 : index
    %c0_7 = arith.constant 0 : index
    %12 = vector.load %arg3[%c3, %c0_7] : memref<8x128xf32, #tpu.memory_space<vmem>>, vector<1x128xf32>
    %13 = vector.broadcast %12 : vector<1x128xf32> to vector<16x128xf32>
    %14 = arith.mulf %11, %13 : vector<16x128xf32>
    %15 = arith.mulf %14, %14 : vector<16x128xf32>
    %cst_8 = arith.constant dense<0.000000e+00> : vector<16xf32>
    %16 = vector.multi_reduction <add>, %15, %cst_8 [1] : vector<16x128xf32> to vector<16xf32>
    %17 = vector.shape_cast %16 : vector<16xf32> to vector<16x1xf32>
    %cst_9 = arith.constant 3.125000e-02 : f32
    %18 = vector.broadcast %cst_9 : f32 to vector<16x1xf32>
    %19 = arith.mulf %17, %18 : vector<16x1xf32>
    %cst_10 = arith.constant 9.99999974E-6 : f32
    %20 = vector.broadcast %cst_10 : f32 to vector<16x1xf32>
    %21 = arith.addf %19, %20 : vector<16x1xf32>
    %22 = math.rsqrt %21 : vector<16x1xf32>
    %23 = vector.broadcast %22 : vector<16x1xf32> to vector<16x128xf32>
    %24 = arith.mulf %14, %23 : vector<16x128xf32>
    %c1 = arith.constant 1 : index
    %c0_11 = arith.constant 0 : index
    %25 = vector.load %arg3[%c1, %c0_11] : memref<8x128xf32, #tpu.memory_space<vmem>>, vector<1x128xf32>
    %26 = vector.broadcast %25 : vector<1x128xf32> to vector<16x128xf32>
    %27 = arith.mulf %24, %26 : vector<16x128xf32>
    %c2 = arith.constant 2 : index
    %c0_12 = arith.constant 0 : index
    %28 = vector.load %arg3[%c2, %c0_12] : memref<8x128xf32, #tpu.memory_space<vmem>>, vector<1x128xf32>
    %29 = vector.broadcast %28 : vector<1x128xf32> to vector<16x128xf32>
    %30 = arith.addf %27, %29 : vector<16x128xf32>
    %cst_13 = arith.constant 0.000000e+00 : f32
    %31 = vector.broadcast %cst_13 : f32 to vector<16x128xf32>
    %32 = arith.maximumf %30, %31 : vector<16x128xf32>
    %c0_14 = arith.constant 0 : index
    %c0_15 = arith.constant 0 : index
    %33 = vector.load %arg4[%c0_14, %c0_15] : memref<8x128xf32, #tpu.memory_space<vmem>>, vector<8x128xf32>
    %34 = tpu.concatenate %33, %33 in 0 : vector<8x128xf32>, vector<8x128xf32> -> vector<16x128xf32>
    %35 = arith.addf %32, %34 : vector<16x128xf32>
    %c0_16 = arith.constant 0 : index
    %c0_17 = arith.constant 0 : index
    %36 = vector.load %arg5[%c0_16, %c0_17] : memref<16x128xf32, #tpu.memory_space<vmem>>, vector<16x128xf32>
    tpu.vector_store %arg5[%c0_16, %c0_17], %35 {strides = array<i32>} : memref<16x128xf32, #tpu.memory_space<vmem>>, vector<16x128xf32>,
    return
  }
  func.func @transform_0(%arg0: i32) -> (i32, i32) {
    %c0_i32 = arith.constant 0 : i32
    %c0_i32_0 = arith.constant 0 : i32
    return %arg0, %c0_i32 : i32, i32
  }
  func.func @transform_1(%arg0: i32) -> (i32, i32) {
    %c0_i32 = arith.constant 0 : i32
    %c0_i32_0 = arith.constant 0 : i32
    %c0_i32_1 = arith.constant 0 : i32
    return %c0_i32, %c0_i32_0 : i32, i32
  }
  func.func @transform_2(%arg0: i32) -> (i32, i32) {
    %c0_i32 = arith.constant 0 : i32
    %c0_i32_0 = arith.constant 0 : i32
    %c0_i32_1 = arith.constant 0 : i32
    return %c0_i32, %c0_i32_0 : i32, i32
  }
  func.func @transform_3(%arg0: i32) -> (i32, i32) {
    %c0_i32 = arith.constant 0 : i32
    %c0_i32_0 = arith.constant 0 : i32
    %c0_i32_1 = arith.constant 0 : i32
    return %c0_i32, %c0_i32_0 : i32, i32
  }
  func.func @transform_4(%arg0: i32) -> (i32, i32) {
    %c0_i32 = arith.constant 0 : i32
    %c0_i32_0 = arith.constant 0 : i32
    return %arg0, %c0_i32 : i32, i32
  }
}

</mosaic_0001>

<bundles_post_ra>
// kernel: tpu_custom_call.1
= control target key start
LH: loop header
LB: loop body
LE: loop exit
PB: predicated region body
PF: predicated region fallthrough
CT: control target
= control target key end

     0   :  { %9 = vsyncpa [#allocation3], 0  ;;  %s439_s0 = inlined_call_operand.hbm [shape: f32[16,16], index: 0, kind: input, shape index: {}]   ;;  %s440_s1 = inlined_call_operand.hbm [shape: f32[16,128], index: 1, kind: input, shape index: {}]   ;;  %s441_s2 = inlined_call_operand.hbm [shape: f32[8,128], index: 2, kind: input, shape index: {}]   ;;  %s442_s3 = inlined_call_operand.vmem [shape: f32[8,128], index: 3, kind: input, shape index: {}]   ;;  %s443_s4 = inlined_call_operand.hbm [shape: f32[16,128], index: 4, kind: output, shape index: {}]  }
   0x1   :  { %10 = vsyncpa [#allocation6], 0 }
   0x2   :  { %11 = vsyncpa [#allocation4], 0  ;;  %s341_s15 = smov [#allocation5]   ;;  %s342_s17 = smov [#allocation2]  }
   0x3   :  { %s29_s16 = sshll.u32 %s341_s15, 4  ;;  %s17_s18 = sshll.u32 %s342_s17, 4  ;;  %s30_s16 = int_to_ptr.vmem [resolvable:$true] %s29_s16  ;;  %s372_s18 = int_to_ptr.vmem [resolvable:$true] %s17_s18 }
   0x4   :  { %s247_s21 = scalar_lea.hbm %s440_s1, 256 }
   0x5   :  { %p248_p0 = scmp.ne.s32.totalorder %s440_s1, %s247_s21  ;;  %p251_p1 = scmp.lt.u32.totalorder %s247_s21, %s440_s1 }
   0x7   :  { %p253_p2 = pnand %p251_p1, %p248_p0 }
   0x9   :  { %256 = shalt.err (!%p253_p2)
}
   0xa   :  { %s257_s26 = scalar_lea.vmem %s30_s16, 256  ;;  %p262_p4 = scmp.lt.s32.totalorder %s30_s16, %s30_s16 }
   0xb   :  { %p258_p3 = scmp.ne.s32.totalorder %s30_s16, %s257_s26  ;;  %p263_p5 = scmp.lt.s32.totalorder %s257_s26, %s257_s26 }
   0xd   :  { %p264_p6 = por %p263_p5, %p262_p4 }
   0xf   :  { %p265_p7 = pnand %p264_p6, %p258_p3 }
  0x11   :  { %268 = shalt.err (!%p265_p7)
}
  0x12   :  { %s343_s27 = smov 128   ;;  %s344_s28 = smov 8  }
  0x13   :  { %35 = dma.hbm_to_vmem [thread:$0]  %s440_s1, 256, %s30_s16, [#allocation6], %s343_s27, %s343_s27, %s344_s28  }
  0x14   :  { %s269_s7 = scalar_lea.hbm %s439_s0, 256 }
  0x15   :  { %p270_p8 = scmp.ne.s32.totalorder %s439_s0, %s269_s7  ;;  %p273_p9 = scmp.lt.u32.totalorder %s269_s7, %s439_s0 }
  0x17   :  { %p275_p10 = pnand %p273_p9, %p270_p8 }
  0x19   :  { %278 = shalt.err (!%p275_p10)
}
  0x1a   :  { %s279_s12 = scalar_lea.vmem %s372_s18, 256  ;;  %p284_p12 = scmp.lt.s32.totalorder %s372_s18, %s372_s18 }
  0x1b   :  { %p280_p11 = scmp.ne.s32.totalorder %s372_s18, %s279_s12  ;;  %p285_p13 = scmp.lt.s32.totalorder %s279_s12, %s279_s12 }
  0x1d   :  { %p286_p0 = por %p285_p13, %p284_p12 }
  0x1f   :  { %p287_p1 = pnand %p286_p0, %p280_p11 }
  0x21   :  { %290 = shalt.err (!%p287_p1)
}
  0x22   :  { %23 = dma.hbm_to_vmem [thread:$0]  %s439_s0, 256, %s372_s18, [#allocation3], %s343_s27, %s343_s27, %s344_s28  }
  0x23   :  { %s345_s14 = smov [#allocation7]   ;;  %s291_s19 = scalar_lea.hbm %s441_s2, 128 }
  0x24   :  { %s42_s15 = sshll.u32 %s345_s14, 4  ;;  %p292_p2 = scmp.ne.s32.totalorder %s441_s2, %s291_s19  ;;  %s43_s15 = int_to_ptr.vmem [resolvable:$true] %s42_s15 }
  0x25   :  { %p295_p3 = scmp.lt.u32.totalorder %s291_s19, %s441_s2 }
  0x27   :  { %p297_p4 = pnand %p295_p3, %p292_p2 }
  0x29   :  { %300 = shalt.err (!%p297_p4)
}
  0x2a   :  { %s301_s24 = scalar_lea.vmem %s43_s15, 128  ;;  %p306_p6 = scmp.lt.s32.totalorder %s43_s15, %s43_s15 }
  0x2b   :  { %p302_p5 = scmp.ne.s32.totalorder %s43_s15, %s301_s24  ;;  %p307_p7 = scmp.lt.s32.totalorder %s301_s24, %s301_s24 }
  0x2d   :  { %p308_p8 = por %p307_p7, %p306_p6 }
  0x2f   :  { %p309_p9 = pnand %p308_p8, %p302_p5 }
  0x31   :  { %312 = shalt.err (!%p309_p9)
}
  0x32   :  { %45 = dma.hbm_to_vmem [thread:$0]  %s441_s2, 128, %s43_s15, [#allocation6]  }
  0x33   :  { %335 = dma.done.wait [#allocation3], 256  }
  0x34   :  { %336 = vsyncadd [#allocation3], 4294967040 }
  0x35   :  { %337 = dma.done.wait [#allocation6], 384  }
  0x36   :  { %338 = vsyncadd [#allocation6], 4294966912  ;;  %vm66_vm0 = vcmask 130048   ;;  %v59_v0 = vld [vmem:[#allocation5] sm:$0xff]  ;;  %v60_v1 = vld [vmem:[#allocation5 + $0x8] sm:$0xff]  ;;  %s346_s26 = smov [#allocation8]  }
  0x37   :  { %v57_v2 = vld [vmem:[#allocation2] sm:$0xff]  ;;  %v233_v3 = vpack.c.bf16 %v60_v1, %v59_v0  ;;  %v58_v4 = vld [vmem:[#allocation2 + $0x8] sm:$0xff]  ;;  %s203_s29 = sshll.u32 %s346_s26, 4  ;;  %s204_s29 = int_to_ptr.vmem [resolvable:$true] %s203_s29 }
  0x38   :  { %230 = vmatprep.mubr.msk.f32.mxu0 %vm66_vm0, %v57_v2  ;;  %v216_v5 = vld [vmem:[#allocation7] ss:$0 sm:$0xff]  ;;  %v219_v12 = vld [vmem:[#allocation7 + $0x3] ss:$0 sm:$0xff]  ;;  %v220_v28 = vld [vmem:[#allocation7 + $0x1] ss:$0 sm:$0xff]  ;;  %p318_p11 = scmp.lt.s32.totalorder %s204_s29, %s204_s29 }
  0x39   :  { %234 = vmatprep.subr.bf16.mxu0 %v233_v3  ;;  %v221_v30 = vld [vmem:[#allocation7 + $0x2] ss:$0 sm:$0xff]  ;;  %s313_s30 = scalar_lea.vmem %s204_s29, 256 }
  0x3a   :  { %236 = vmatpush3.bf16.msra.mxu0 %v233_v3  ;;  %v193_v35 = vld [vmem:[%s442_s3] sm:$0xff]  ;;  %p314_p10 = scmp.ne.s32.totalorder %s204_s29, %s313_s30  ;;  %p319_p12 = scmp.lt.s32.totalorder %s313_s30, %s313_s30 }
  0x3c   :  { %p320_p13 = por %p319_p12, %p318_p11 }
  0x3d   :  { %231 = vmatmul.mubr.msk.f32.vlgmr.msra.gmra.mrb[0].mxu0 %vm66_vm0, %v58_v4 }
  0x3e   :  { %p321_p0 = pnand %p320_p13, %p314_p10 }
 0x110   :  { %v232_v6 = vpop.f32.mrb[0].mxu0 }
 0x111   :  { %v139_v7 = vpop.f32.mrb[1].mxu0  ;;  %v145_v9 = vadd.f32 %v232_v6, %v216_v5 }
 0x112   :  { %v140_v8 = vadd.f32 %v216_v5, %v139_v7 }
 0x114   :  { %148 = vadd.xlane.f32.xlu0 %v140_v8 }
 0x118   :  { %150 = vadd.xlane.f32.xlu0 %v145_v9 }
 0x1a1   :  { %v149_v10 = vpop.xlane.xlu0 %148 }
 0x1a2   :  { %v152_v11 = vmul.f32 0.03125, %v149_v10 }
 0x1a4   :  { %v154_v13 = vsub.f32 %v140_v8, %v152_v11 }
 0x1a5   :  { %v151_v14 = vpop.xlane.xlu0 %150 }
 0x1a6   :  { %v153_v15 = vmul.f32 0.03125, %v151_v14  ;;  %v161_v16 = vmul.f32 %v219_v12, %v154_v13 }
 0x1a8   :  { %v155_v17 = vsub.f32 %v145_v9, %v153_v15  ;;  %v163_v18 = vmul.f32 %v161_v16, %v161_v16 }
 0x1aa   :  { %165 = vadd.xlane.f32.xlu1 %v163_v18  ;;  %v162_v19 = vmul.f32 %v219_v12, %v155_v17 }
 0x1ac   :  { %v164_v20 = vmul.f32 %v162_v19, %v162_v19 }
 0x1ae   :  { %167 = vadd.xlane.f32.xlu1 %v164_v20 }
 0x237   :  { %v166_v21 = vpop.xlane.xlu1 %165 }
 0x238   :  { %v169_v22 = vmul.f32 0.03125, %v166_v21 }
 0x23a   :  { %v171_v23 = vadd.f32 1e-05, %v169_v22 }
 0x23b   :  { %v168_v24 = vpop.xlane.xlu1 %167 }
 0x23c   :  { %243 = vrsqrt.f32 %v171_v23  ;;  %v170_v25 = vmul.f32 0.03125, %v168_v24 }
 0x23e   :  { %v172_v26 = vadd.f32 1e-05, %v170_v25 }
 0x240   :  { %245 = vrsqrt.f32 %v172_v26 }
 0x246   :  { %v244_v27 = vpop.eup %243 }
 0x247   :  { %v175_v29 = vmul.f32 %v244_v27, %v161_v16 }
 0x249   :  { %v182_v31 = vmul.f32 %v220_v28, %v175_v29 }
 0x24a   :  { %v246_v32 = vpop.eup %245 }
 0x24b   :  { %v176_v33 = vmul.f32 %v246_v32, %v162_v19  ;;  %v189_v34 = vadd.f32 %v221_v30, %v182_v31 }
 0x24d   :  { %v183_v36 = vmul.f32 %v220_v28, %v176_v33  ;;  %v191_v37 = vmax.f32 %v189_v34, 0.0 }
 0x24f   :  { %v190_v38 = vadd.f32 %v221_v30, %v183_v36  ;;  %v194_v39 = vadd.f32 %v193_v35, %v191_v37 }
 0x251   :  { %v192_v40 = vmax.f32 %v190_v38, 0.0  ;;  %196 = vst [vmem:[#allocation8] sm:$0xff] %v194_v39 }
 0x253   :  { %v195_v41 = vadd.f32 %v193_v35, %v192_v40 }
 0x255   :  { %197 = vst [vmem:[#allocation8 + $0x8] sm:$0xff] %v195_v41 }
 0x256   :  { %324 = shalt.err (!%p321_p0)
}
 0x257   :  { %s325_s6 = scalar_lea.hbm %s443_s4, 256 }
 0x258   :  { %p326_p1 = scmp.ne.s32.totalorder %s443_s4, %s325_s6  ;;  %p329_p2 = scmp.lt.u32.totalorder %s325_s6, %s443_s4 }
 0x25a   :  { %p331_p3 = pnand %p329_p2, %p326_p1 }
 0x25c   :  { %334 = shalt.err (!%p331_p3)
}
 0x25d   :  { %209 = dma.vmem_to_hbm [thread:$0]  %s204_s29, 256, %s443_s4, [#allocation4], %s343_s27, %s343_s27, %s344_s28  }
 0x25e   :  { %339 = dma.done.wait [#allocation4], 256  }
 0x25f   :  { %340 = vsyncadd [#allocation4], 4294967040 }
 0x260   :  { %213 = vsyncpa [#allocation3], 1 }
 0x261   :  { %214 = vsyncpa [#allocation6], 1 }
 0x262   :  { %215 = vsyncpa [#allocation4], 1 }

// kernel: tpu_custom_call.1
= control target key start
LH: loop header
LB: loop body
LE: loop exit
PB: predicated region body
PF: predicated region fallthrough
CT: control target
= control target key end

     0   :  { %9 = vsyncpa [#allocation3], 0  ;;  %s439_s0 = inlined_call_operand.hbm [shape: f32[16,16], index: 0, kind: input, shape index: {}]   ;;  %s440_s1 = inlined_call_operand.hbm [shape: f32[16,128], index: 1, kind: input, shape index: {}]   ;;  %s441_s2 = inlined_call_operand.hbm [shape: f32[8,128], index: 2, kind: input, shape index: {}]   ;;  %s442_s3 = inlined_call_operand.vmem [shape: f32[8,128], index: 3, kind: input, shape index: {}]   ;;  %s443_s4 = inlined_call_operand.hbm [shape: f32[16,128], index: 4, kind: output, shape index: {}]  }
   0x1   :  { %10 = vsyncpa [#allocation6], 0 }
   0x2   :  { %11 = vsyncpa [#allocation4], 0  ;;  %s341_s15 = smov [#allocation5]   ;;  %s342_s17 = smov [#allocation2]  }
   0x3   :  { %s29_s16 = sshll.u32 %s341_s15, 4  ;;  %s17_s18 = sshll.u32 %s342_s17, 4  ;;  %s30_s16 = int_to_ptr.vmem [resolvable:$true] %s29_s16  ;;  %s372_s18 = int_to_ptr.vmem [resolvable:$true] %s17_s18 }
   0x4   :  { %s247_s21 = scalar_lea.hbm %s440_s1, 256 }
   0x5   :  { %p248_p0 = scmp.ne.s32.totalorder %s440_s1, %s247_s21  ;;  %p251_p1 = scmp.lt.u32.totalorder %s247_s21, %s440_s1 }
   0x7   :  { %p253_p2 = pnand %p251_p1, %p248_p0 }
   0x9   :  { %256 = shalt.err (!%p253_p2)
}
   0xa   :  { %s257_s26 = scalar_lea.vmem %s30_s16, 256  ;;  %p262_p4 = scmp.lt.s32.totalorder %s30_s16, %s30_s16 }
   0xb   :  { %p258_p3 = scmp.ne.s32.totalorder %s30_s16, %s257_s26  ;;  %p263_p5 = scmp.lt.s32.totalorder %s257_s26, %s257_s26 }
   0xd   :  { %p264_p6 = por %p263_p5, %p262_p4 }
   0xf   :  { %p265_p7 = pnand %p264_p6, %p258_p3 }
  0x11   :  { %268 = shalt.err (!%p265_p7)
}
  0x12   :  { %s343_s27 = smov 128   ;;  %s344_s28 = smov 8  }
  0x13   :  { %35 = dma.hbm_to_vmem [thread:$0]  %s440_s1, 256, %s30_s16, [#allocation6], %s343_s27, %s343_s27, %s344_s28  }
  0x14   :  { %s269_s7 = scalar_lea.hbm %s439_s0, 256 }
  0x15   :  { %p270_p8 = scmp.ne.s32.totalorder %s439_s0, %s269_s7  ;;  %p273_p9 = scmp.lt.u32.totalorder %s269_s7, %s439_s0 }
  0x17   :  { %p275_p10 = pnand %p273_p9, %p270_p8 }
  0x19   :  { %278 = shalt.err (!%p275_p10)
}
  0x1a   :  { %s279_s12 = scalar_lea.vmem %s372_s18, 256  ;;  %p284_p12 = scmp.lt.s32.totalorder %s372_s18, %s372_s18 }
  0x1b   :  { %p280_p11 = scmp.ne.s32.totalorder %s372_s18, %s279_s12  ;;  %p285_p13 = scmp.lt.s32.totalorder %s279_s12, %s279_s12 }
  0x1d   :  { %p286_p0 = por %p285_p13, %p284_p12 }
  0x1f   :  { %p287_p1 = pnand %p286_p0, %p280_p11 }
  0x21   :  { %290 = shalt.err (!%p287_p1)
}
  0x22   :  { %23 = dma.hbm_to_vmem [thread:$0]  %s439_s0, 256, %s372_s18, [#allocation3], %s343_s27, %s343_s27, %s344_s28  }
  0x23   :  { %s345_s14 = smov [#allocation7]   ;;  %s291_s19 = scalar_lea.hbm %s441_s2, 128 }
  0x24   :  { %s42_s15 = sshll.u32 %s345_s14, 4  ;;  %p292_p2 = scmp.ne.s32.totalorder %s441_s2, %s291_s19  ;;  %s43_s15 = int_to_ptr.vmem [resolvable:$true] %s42_s15 }
  0x25   :  { %p295_p3 = scmp.lt.u32.totalorder %s291_s19, %s441_s2 }
  0x27   :  { %p297_p4 = pnand %p295_p3, %p292_p2 }
  0x29   :  { %300 = shalt.err (!%p297_p4)
}
  0x2a   :  { %s301_s24 = scalar_lea.vmem %s43_s15, 128  ;;  %p306_p6 = scmp.lt.s32.totalorder %s43_s15, %s43_s15 }
  0x2b   :  { %p302_p5 = scmp.ne.s32.totalorder %s43_s15, %s301_s24  ;;  %p307_p7 = scmp.lt.s32.totalorder %s301_s24, %s301_s24 }
  0x2d   :  { %p308_p8 = por %p307_p7, %p306_p6 }
  0x2f   :  { %p309_p9 = pnand %p308_p8, %p302_p5 }
  0x31   :  { %312 = shalt.err (!%p309_p9)
}
  0x32   :  { %45 = dma.hbm_to_vmem [thread:$0]  %s441_s2, 128, %s43_s15, [#allocation6]  }
  0x33   :  { %335 = dma.done.wait [#allocation3], 256  }
  0x34   :  { %336 = vsyncadd [#allocation3], 4294967040 }
  0x35   :  { %337 = dma.done.wait [#allocation6], 384  }
  0x36   :  { %338 = vsyncadd [#allocation6], 4294966912  ;;  %vm66_vm0 = vcmask 130048   ;;  %v59_v0 = vld [vmem:[#allocation5] sm:$0xff]  ;;  %v60_v1 = vld [vmem:[#allocation5 + $0x8] sm:$0xff]  ;;  %s346_s26 = smov [#allocation8]  }
  0x37   :  { %v57_v2 = vld [vmem:[#allocation2] sm:$0xff]  ;;  %v233_v3 = vpack.c.bf16 %v60_v1, %v59_v0  ;;  %v58_v4 = vld [vmem:[#allocation2 + $0x8] sm:$0xff]  ;;  %s203_s29 = sshll.u32 %s346_s26, 4  ;;  %s204_s29 = int_to_ptr.vmem [resolvable:$true] %s203_s29 }
  0x38   :  { %230 = vmatprep.mubr.msk.f32.mxu0 %vm66_vm0, %v57_v2  ;;  %v216_v5 = vld [vmem:[#allocation7] ss:$0 sm:$0xff]  ;;  %v219_v12 = vld [vmem:[#allocation7 + $0x3] ss:$0 sm:$0xff]  ;;  %v220_v28 = vld [vmem:[#allocation7 + $0x1] ss:$0 sm:$0xff]  ;;  %p318_p11 = scmp.lt.s32.totalorder %s204_s29, %s204_s29 }
  0x39   :  { %234 = vmatprep.subr.bf16.mxu0 %v233_v3  ;;  %v221_v30 = vld [vmem:[#allocation7 + $0x2] ss:$0 sm:$0xff]  ;;  %s313_s30 = scalar_lea.vmem %s204_s29, 256 }
  0x3a   :  { %236 = vmatpush3.bf16.msra.mxu0 %v233_v3  ;;  %v193_v35 = vld [vmem:[%s442_s3] sm:$0xff]  ;;  %p314_p10 = scmp.ne.s32.totalorder %s204_s29, %s313_s30  ;;  %p319_p12 = scmp.lt.s32.totalorder %s313_s30, %s313_s30 }
  0x3c   :  { %p320_p13 = por %p319_p12, %p318_p11 }
  0x3d   :  { %231 = vmatmul.mubr.msk.f32.vlgmr.msra.gmra.mrb[0].mxu0 %vm66_vm0, %v58_v4 }
  0x3e   :  { %p321_p0 = pnand %p320_p13, %p314_p10 }
 0x110   :  { %v232_v6 = vpop.f32.mrb[0].mxu0 }
 0x111   :  { %v139_v7 = vpop.f32.mrb[1].mxu0  ;;  %v145_v9 = vadd.f32 %v232_v6, %v216_v5 }
 0x112   :  { %v140_v8 = vadd.f32 %v216_v5, %v139_v7 }
 0x114   :  { %148 = vadd.xlane.f32.xlu0 %v140_v8 }
 0x118   :  { %150 = vadd.xlane.f32.xlu0 %v145_v9 }
 0x1a1   :  { %v149_v10 = vpop.xlane.xlu0 %148 }
 0x1a2   :  { %v152_v11 = vmul.f32 0.03125, %v149_v10 }
 0x1a4   :  { %v154_v13 = vsub.f32 %v140_v8, %v152_v11 }
 0x1a5   :  { %v151_v14 = vpop.xlane.xlu0 %150 }
 0x1a6   :  { %v153_v15 = vmul.f32 0.03125, %v151_v14  ;;  %v161_v16 = vmul.f32 %v219_v12, %v154_v13 }
 0x1a8   :  { %v155_v17 = vsub.f32 %v145_v9, %v153_v15  ;;  %v163_v18 = vmul.f32 %v161_v16, %v161_v16 }
 0x1aa   :  { %165 = vadd.xlane.f32.xlu1 %v163_v18  ;;  %v162_v19 = vmul.f32 %v219_v12, %v155_v17 }
 0x1ac   :  { %v164_v20 = vmul.f32 %v162_v19, %v162_v19 }
 0x1ae   :  { %167 = vadd.xlane.f32.xlu1 %v164_v20 }
 0x237   :  { %v166_v21 = vpop.xlane.xlu1 %165 }
 0x238   :  { %v169_v22 = vmul.f32 0.03125, %v166_v21 }
 0x23a   :  { %v171_v23 = vadd.f32 1e-05, %v169_v22 }
 0x23b   :  { %v168_v24 = vpop.xlane.xlu1 %167 }
 0x23c   :  { %243 = vrsqrt.f32 %v171_v23  ;;  %v170_v25 = vmul.f32 0.03125, %v168_v24 }
 0x23e   :  { %v172_v26 = vadd.f32 1e-05, %v170_v25 }
 0x240   :  { %245 = vrsqrt.f32 %v172_v26 }
 0x246   :  { %v244_v27 = vpop.eup %243 }
 0x247   :  { %v175_v29 = vmul.f32 %v244_v27, %v161_v16 }
 0x249   :  { %v182_v31 = vmul.f32 %v220_v28, %v175_v29 }
 0x24a   :  { %v246_v32 = vpop.eup %245 }
 0x24b   :  { %v176_v33 = vmul.f32 %v246_v32, %v162_v19  ;;  %v189_v34 = vadd.f32 %v221_v30, %v182_v31 }
 0x24d   :  { %v183_v36 = vmul.f32 %v220_v28, %v176_v33  ;;  %v191_v37 = vmax.f32 %v189_v34, 0.0 }
 0x24f   :  { %v190_v38 = vadd.f32 %v221_v30, %v183_v36  ;;  %v194_v39 = vadd.f32 %v193_v35, %v191_v37 }
 0x251   :  { %v192_v40 = vmax.f32 %v190_v38, 0.0  ;;  %196 = vst [vmem:[#allocation8] sm:$0xff] %v194_v39 }
 0x253   :  { %v195_v41 = vadd.f32 %v193_v35, %v192_v40 }
 0x255   :  { %197 = vst [vmem:[#allocation8 + $0x8] sm:$0xff] %v195_v41 }
 0x256   :  { %324 = shalt.err (!%p321_p0)
}
 0x257   :  { %s325_s6 = scalar_lea.hbm %s443_s4, 256 }
 0x258   :  { %p326_p1 = scmp.ne.s32.totalorder %s443_s4, %s325_s6  ;;  %p329_p2 = scmp.lt.u32.totalorder %s325_s6, %s443_s4 }
 0x25a   :  { %p331_p3 = pnand %p329_p2, %p326_p1 }
 0x25c   :  { %334 = shalt.err (!%p331_p3)
}
 0x25d   :  { %209 = dma.vmem_to_hbm [thread:$0]  %s204_s29, 256, %s443_s4, [#allocation4], %s343_s27, %s343_s27, %s344_s28  }
 0x25e   :  { %339 = dma.done.wait [#allocation4], 256  }
 0x25f   :  { %340 = vsyncadd [#allocation4], 4294967040 }
 0x260   :  { %213 = vsyncpa [#allocation3], 1 }
 0x261   :  { %214 = vsyncpa [#allocation6], 1 }
 0x262   :  { %215 = vsyncpa [#allocation4], 1 }

</bundles_post_ra>
